<compile_context>
chip_gen: v6e
topology: v6e:2x2x1
jax: 0.10.0
libtpu: 0.0.40
codegen_flags: <defaults>
</compile_context>

<pallas_src>
import jax
import jax.numpy as jnp
from jax.experimental import pallas as pl
from jax.experimental.pallas import tpu as pltpu

INPUT_SIZE = 54
HIDDEN_DIM = 64
OUTPUT_SIZE = 3


def _round_up(x, m):
    return ((x + m - 1) // m) * m


def simple_nn_kernel(xt_ref, w1_ref, b1_ref, w2_ref, b2_ref, w3_ref, b3_ref,
                     o_ref):
    # Feature-major layout: batch on the lane axis.
    # xt: (54, TB) bf16; w1: (64, 54) bf16; w2: (64, 64) bf16; w3: (3, 64) bf16
    # b1/b2: (64, 1) f32; b3: (3, 1) f32.  o: (3, TB) f32.
    xt = xt_ref[...]

    # fc1 + ReLU: (64, TB) = (64, 54) @ (54, TB); bf16 MXU, f32 accumulation.
    h1 = jnp.dot(w1_ref[...], xt, preferred_element_type=jnp.float32)
    h1 = jnp.maximum(h1 + b1_ref[...], 0.0)

    # fc2 + ReLU: (64, TB) = (64, 64) @ (64, TB).
    h2 = jnp.dot(w2_ref[...], h1.astype(jnp.bfloat16),
                 preferred_element_type=jnp.float32)
    h2 = jnp.maximum(h2 + b2_ref[...], 0.0)

    # fc3: (3, TB) = (3, 64) @ (64, TB); lane-dense output store.
    logits_t = jnp.dot(w3_ref[...], h2.astype(jnp.bfloat16),
                       preferred_element_type=jnp.float32)
    logits_t = logits_t + b3_ref[...]

    # Row 0 -> tanh (steering), rows 1,2 -> sigmoid (throttle, brake).
    # Single EUP transcendental per element: tanh(z) = 2*sigmoid(2z) - 1.
    row = jax.lax.broadcasted_iota(jnp.int32, logits_t.shape, 0)
    is_steer = row == 0
    s = jax.nn.sigmoid(jnp.where(is_steer, 2.0 * logits_t, logits_t))
    o_ref[...] = jnp.where(is_steer, 2.0 * s - 1.0, s).astype(o_ref.dtype)


def simple_nn_forward(x, params, *, block_b=2048):
    """x: (B, 54) float. Returns (B, 3) float32 matching SimpleNN.forward."""
    w1, b1, w2, b2, w3, b3 = params  # weights in PyTorch (out, in) layout
    B = x.shape[0]

    # Batch tile: multiple of 256 (fills v6e/v7x MXU lanes / keeps the output
    # store lane-dense).  When the whole padded batch fits in two tiles, split
    # it in two so both v7x TensorCores get work; otherwise use block_b tiles.
    block_b = _round_up(block_b, 256)
    bp_min = _round_up(B, 256)
    if bp_min <= 2 * block_b:
        TB = _round_up(-(-bp_min // 2), 256)
    else:
        TB = block_b
    Bp = _round_up(B, TB)
    nb = Bp // TB

    # Feed x transposed (feature-major) in bf16; transpose/cast/pad fuse into
    # one XLA pass.  Weights go to bf16 (f32 accumulation on the MXU); biases
    # stay f32 column vectors for the lane-broadcast adds.
    x_t = jnp.pad(x.astype(jnp.bfloat16).T, ((0, 0), (0, Bp - B)))  # (54, Bp)
    w1_bf = w1.astype(jnp.bfloat16)   # (64, 54)
    w2_bf = w2.astype(jnp.bfloat16)   # (64, 64)
    w3_bf = w3.astype(jnp.bfloat16)   # (3, 64)

    resident = lambda shape: pl.BlockSpec(shape, lambda i: (0, 0))

    out_t = pl.pallas_call(
        simple_nn_kernel,
        out_shape=jax.ShapeDtypeStruct((OUTPUT_SIZE, Bp), jnp.float32),
        grid=(nb,),
        in_specs=[
            pl.BlockSpec((INPUT_SIZE, TB), lambda i: (0, i)),   # x^T: tiled
            resident(w1_bf.shape), resident(b1.shape),          # weights/bias
            resident(w2_bf.shape), resident(b2.shape),          # stay resident
            resident(w3_bf.shape), resident(b3.shape),          # in VMEM
        ],
        out_specs=pl.BlockSpec((OUTPUT_SIZE, TB), lambda i: (0, i)),
        compiler_params=pltpu.CompilerParams(
            dimension_semantics=("parallel",)),
    )(x_t, w1_bf, b1, w2_bf, b2, w3_bf, b3)

    # (3, Bp) -> (B, 3); trivial XLA transpose of a tiny array.
    return out_t[:, :B].T


def init_params(key, input_size=INPUT_SIZE, hidden_dim=HIDDEN_DIM,
                output_size=OUTPUT_SIZE):
    """nn.Linear-style U(-1/sqrt(fan_in), 1/sqrt(fan_in)) init (float32).

    Weights are stored in PyTorch (out, in) layout; biases as column vectors
    (out, 1), matching the feature-major kernel directly.
    """
    k1, k2, k3, k4, k5, k6 = jax.random.split(key, 6)

    def lin(kw, kb, fan_in, fan_out):
        bound = 1.0 / jnp.sqrt(jnp.float32(fan_in))
        w = jax.random.uniform(kw, (fan_out, fan_in), jnp.float32, -bound, bound)
        b = jax.random.uniform(kb, (fan_out, 1), jnp.float32, -bound, bound)
        return w, b

    w1, b1 = lin(k1, k2, input_size, hidden_dim)
    w2, b2 = lin(k3, k4, hidden_dim, hidden_dim)
    w3, b3 = lin(k5, k6, hidden_dim, output_size)
    return (w1, b1, w2, b2, w3, b3)


if __name__ == "__main__":
    key = jax.random.PRNGKey(0)
    kx, kp = jax.random.split(key)

    B = 8
    x = jax.random.normal(kx, (B, INPUT_SIZE), dtype=jnp.float32)
    params = init_params(kp)

    out = simple_nn_forward(x, params)
    out = jax.block_until_ready(out)

    # Pure-JAX float32 reference (matches the PyTorch module).
    w1, b1, w2, b2, w3, b3 = params
    h1 = jnp.maximum(x @ w1.T + b1.T, 0.0)
    h2 = jnp.maximum(h1 @ w2.T + b2.T, 0.0)
    logits = h2 @ w3.T + b3.T
    ref = jnp.concatenate(
        [jnp.tanh(logits[:, 0:1]),
         jax.nn.sigmoid(logits[:, 1:2]),
         jax.nn.sigmoid(logits[:, 2:3])], axis=1)

    assert out.shape == (B, OUTPUT_SIZE), out.shape
    # Tolerance accounts for bf16 inputs/weights (f32 accumulation).
    assert jnp.allclose(out, ref, atol=2e-2, rtol=2e-2), (
        float(jnp.max(jnp.abs(out - ref))))
    print("KERNEL_OK")
</pallas_src>

<mosaic_0001>
module attributes {stable_mosaic.version = 11 : i64} {
  func.func @simple_nn_kernel(%arg0: i32, %arg1: memref<54x256xbf16, #tpu.memory_space<vmem>>, %arg2: memref<64x54xbf16, #tpu.memory_space<vmem>>, %arg3: memref<64x1xf32, #tpu.memory_space<vmem>>, %arg4: memref<64x64xbf16, #tpu.memory_space<vmem>>, %arg5: memref<64x1xf32, #tpu.memory_space<vmem>>, %arg6: memref<3x64xbf16, #tpu.memory_space<vmem>>, %arg7: memref<3x1xf32, #tpu.memory_space<vmem>>, %arg8: memref<3x256xf32, #tpu.memory_space<vmem>>) attributes {dimension_semantics = [#tpu.dimension_semantics<parallel>], iteration_bounds = array<i64: 1>, scalar_prefetch = 0 : i64, scratch_operands = 0 : i64, tpu.core_type = #tpu.core_type<tc>, window_params = [{transform_indices = @transform_0, window_bounds = array<i64: 54, 256>}, {pipeline_mode = #tpu.pipeline_mode<synchronous>, transform_indices = @transform_1, window_bounds = array<i64: 64, 54>}, {pipeline_mode = #tpu.pipeline_mode<synchronous>, transform_indices = @transform_2, window_bounds = array<i64: 64, 1>}, {pipeline_mode = #tpu.pipeline_mode<synchronous>, transform_indices = @transform_3, window_bounds = array<i64: 64, 64>}, {pipeline_mode = #tpu.pipeline_mode<synchronous>, transform_indices = @transform_4, window_bounds = array<i64: 64, 1>}, {pipeline_mode = #tpu.pipeline_mode<synchronous>, transform_indices = @transform_5, window_bounds = array<i64: 3, 64>}, {pipeline_mode = #tpu.pipeline_mode<synchronous>, transform_indices = @transform_6, window_bounds = array<i64: 3, 1>}, {transform_indices = @transform_7, window_bounds = array<i64: 3, 256>}]} {
    %c0 = arith.constant 0 : index
    %c0_0 = arith.constant 0 : index
    %0 = vector.load %arg1[%c0, %c0_0] : memref<54x256xbf16, #tpu.memory_space<vmem>>, vector<54x256xbf16>
    %c0_1 = arith.constant 0 : index
    %c0_2 = arith.constant 0 : index
    %1 = vector.load %arg2[%c0_1, %c0_2] : memref<64x54xbf16, #tpu.memory_space<vmem>>, vector<64x54xbf16>
    %cst = arith.constant dense<0.000000e+00> : vector<64x256xf32>
    %2 = tpu.matmul %1, %0, %cst {dimension_numbers = #tpu.dot_dimension_numbers<[1], [0], [0], [1], [0, 0, 1, 1], [], []>} : vector<64x54xbf16>, vector<54x256xbf16>, vector<64x256xf32> -> vector<64x256xf32>
    %c0_3 = arith.constant 0 : index
    %c0_4 = arith.constant 0 : index
    %3 = vector.load %arg3[%c0_3, %c0_4] : memref<64x1xf32, #tpu.memory_space<vmem>>, vector<64x1xf32>
    %4 = vector.broadcast %3 : vector<64x1xf32> to vector<64x256xf32>
    %5 = arith.addf %2, %4 : vector<64x256xf32>
    %cst_5 = arith.constant 0.000000e+00 : f32
    %6 = vector.broadcast %cst_5 : f32 to vector<64x256xf32>
    %7 = arith.maximumf %5, %6 : vector<64x256xf32>
    %c0_6 = arith.constant 0 : index
    %c0_7 = arith.constant 0 : index
    %8 = vector.load %arg4[%c0_6, %c0_7] : memref<64x64xbf16, #tpu.memory_space<vmem>>, vector<64x64xbf16>
    %9 = arith.truncf %7 : vector<64x256xf32> to vector<64x256xbf16>
    %cst_8 = arith.constant dense<0.000000e+00> : vector<64x256xf32>
    %10 = tpu.matmul %8, %9, %cst_8 {dimension_numbers = #tpu.dot_dimension_numbers<[1], [0], [0], [1], [0, 0, 1, 1], [], []>} : vector<64x64xbf16>, vector<64x256xbf16>, vector<64x256xf32> -> vector<64x256xf32>
    %c0_9 = arith.constant 0 : index
    %c0_10 = arith.constant 0 : index
    %11 = vector.load %arg5[%c0_9, %c0_10] : memref<64x1xf32, #tpu.memory_space<vmem>>, vector<64x1xf32>
    %12 = vector.broadcast %11 : vector<64x1xf32> to vector<64x256xf32>
    %13 = arith.addf %10, %12 : vector<64x256xf32>
    %cst_11 = arith.constant 0.000000e+00 : f32
    %14 = vector.broadcast %cst_11 : f32 to vector<64x256xf32>
    %15 = arith.maximumf %13, %14 : vector<64x256xf32>
    %c0_12 = arith.constant 0 : index
    %c0_13 = arith.constant 0 : index
    %16 = vector.load %arg6[%c0_12, %c0_13] : memref<3x64xbf16, #tpu.memory_space<vmem>>, vector<3x64xbf16>
    %17 = arith.truncf %15 : vector<64x256xf32> to vector<64x256xbf16>
    %cst_14 = arith.constant dense<0.000000e+00> : vector<3x256xf32>
    %18 = tpu.matmul %16, %17, %cst_14 {dimension_numbers = #tpu.dot_dimension_numbers<[1], [0], [0], [1], [0, 0, 1, 1], [], []>} : vector<3x64xbf16>, vector<64x256xbf16>, vector<3x256xf32> -> vector<3x256xf32>
    %c0_15 = arith.constant 0 : index
    %c0_16 = arith.constant 0 : index
    %19 = vector.load %arg7[%c0_15, %c0_16] : memref<3x1xf32, #tpu.memory_space<vmem>>, vector<3x1xf32>
    %20 = vector.broadcast %19 : vector<3x1xf32> to vector<3x256xf32>
    %21 = arith.addf %18, %20 : vector<3x256xf32>
    %22 = tpu.iota {dimensions = array<i32: 0>} : vector<3x256xi32>
    %c0_i32 = arith.constant 0 : i32
    %23 = vector.broadcast %c0_i32 : i32 to vector<3x256xi32>
    %24 = arith.cmpi eq, %22, %23 : vector<3x256xi32>
    %cst_17 = arith.constant 2.000000e+00 : f32
    %25 = vector.broadcast %cst_17 : f32 to vector<3x256xf32>
    %26 = arith.mulf %25, %21 : vector<3x256xf32>
    %27 = arith.select %24, %26, %21 : vector<3x256xi1>, vector<3x256xf32>
    %28 = arith.negf %27 : vector<3x256xf32>
    %29 = math.exp %28 : vector<3x256xf32>
    %cst_18 = arith.constant 1.000000e+00 : f32
    %30 = vector.broadcast %cst_18 : f32 to vector<3x256xf32>
    %31 = arith.addf %30, %29 : vector<3x256xf32>
    %32 = arith.divf %30, %31 : vector<3x256xf32>
    %cst_19 = arith.constant 2.000000e+00 : f32
    %33 = vector.broadcast %cst_19 : f32 to vector<3x256xf32>
    %34 = arith.mulf %33, %32 : vector<3x256xf32>
    %cst_20 = arith.constant 1.000000e+00 : f32
    %35 = vector.broadcast %cst_20 : f32 to vector<3x256xf32>
    %36 = arith.subf %34, %35 : vector<3x256xf32>
    %37 = arith.select %24, %36, %32 : vector<3x256xi1>, vector<3x256xf32>
    %c0_21 = arith.constant 0 : index
    %c0_22 = arith.constant 0 : index
    %38 = vector.load %arg8[%c0_21, %c0_22] : memref<3x256xf32, #tpu.memory_space<vmem>>, vector<3x256xf32>
    tpu.vector_store %arg8[%c0_21, %c0_22], %37 {strides = array<i32>} : memref<3x256xf32, #tpu.memory_space<vmem>>, vector<3x256xf32>,
    return
  }
  func.func @transform_0(%arg0: i32) -> (i32, i32) {
    %c0_i32 = arith.constant 0 : i32
    %c0_i32_0 = arith.constant 0 : i32
    return %c0_i32, %arg0 : i32, i32
  }
  func.func @transform_1(%arg0: i32) -> (i32, i32) {
    %c0_i32 = arith.constant 0 : i32
    %c0_i32_0 = arith.constant 0 : i32
    %c0_i32_1 = arith.constant 0 : i32
    return %c0_i32, %c0_i32_0 : i32, i32
  }
  func.func @transform_2(%arg0: i32) -> (i32, i32) {
    %c0_i32 = arith.constant 0 : i32
    %c0_i32_0 = arith.constant 0 : i32
    %c0_i32_1 = arith.constant 0 : i32
    return %c0_i32, %c0_i32_0 : i32, i32
  }
  func.func @transform_3(%arg0: i32) -> (i32, i32) {
    %c0_i32 = arith.constant 0 : i32
    %c0_i32_0 = arith.constant 0 : i32
    %c0_i32_1 = arith.constant 0 : i32
    return %c0_i32, %c0_i32_0 : i32, i32
  }
  func.func @transform_4(%arg0: i32) -> (i32, i32) {
    %c0_i32 = arith.constant 0 : i32
    %c0_i32_0 = arith.constant 0 : i32
    %c0_i32_1 = arith.constant 0 : i32
    return %c0_i32, %c0_i32_0 : i32, i32
  }
  func.func @transform_5(%arg0: i32) -> (i32, i32) {
    %c0_i32 = arith.constant 0 : i32
    %c0_i32_0 = arith.constant 0 : i32
    %c0_i32_1 = arith.constant 0 : i32
    return %c0_i32, %c0_i32_0 : i32, i32
  }
  func.func @transform_6(%arg0: i32) -> (i32, i32) {
    %c0_i32 = arith.constant 0 : i32
    %c0_i32_0 = arith.constant 0 : i32
    %c0_i32_1 = arith.constant 0 : i32
    return %c0_i32, %c0_i32_0 : i32, i32
  }
  func.func @transform_7(%arg0: i32) -> (i32, i32) {
    %c0_i32 = arith.constant 0 : i32
    %c0_i32_0 = arith.constant 0 : i32
    return %c0_i32, %arg0 : i32, i32
  }
}

</mosaic_0001>

<bundles_post_ra>
// kernel: tpu_custom_call.1
= control target key start
LH: loop header
LB: loop body
LE: loop exit
PB: predicated region body
PF: predicated region fallthrough
CT: control target
= control target key end

     0   :  { %vm159_vm0 = vcmask 1042432   ;;  %v627_v4 = vmov 0   ;;  %vm146_vm1 = vcmask 441344   ;;  %s795_s0 = inlined_call_operand.vmem [shape: bf16[54,256], index: 0, kind: input, shape index: {}]   ;;  %s796_s1 = inlined_call_operand.vmem [shape: bf16[64,54], index: 1, kind: input, shape index: {}]   ;;  %s797_s2 = inlined_call_operand.vmem [shape: f32[64,1], index: 2, kind: input, shape index: {}]   ;;  %s798_s3 = inlined_call_operand.vmem [shape: bf16[64,64], index: 3, kind: input, shape index: {}]   ;;  %s799_s4 = inlined_call_operand.vmem [shape: f32[64,1], index: 4, kind: input, shape index: {}]   ;;  %s800_s5 = inlined_call_operand.vmem [shape: bf16[3,64], index: 5, kind: input, shape index: {}]   ;;  %s801_s6 = inlined_call_operand.vmem [shape: f32[3,1], index: 6, kind: input, shape index: {}]   ;;  %s802_s7 = inlined_call_operand.hbm [shape: f32[3,256], index: 7, kind: output, shape index: {}]  }
   0x1   :  { %v34_v0 = vld [vmem:[%s795_s0 + $0x30] sm:$0x77]  ;;  %v580_v3 = vld [vmem:[%s795_s0 + $0x24] ss:$8 sps:$4 sm:$0xff]   ;;  %198 = vmatprep.mubr.bf16.mxu0 %v627_v4  ;;  %576 = vset.pattern.permute.xlu0 %v627_v4  ;;  %v582_v6 = vld [vmem:[%s795_s0 + $0x20] ss:$8 sps:$4 sm:$0xff]  }
   0x2   :  { %v555_v1 = vcombine.high %v34_v0, %v34_v0  ;;  %v554_v2 = vcombine.low %v34_v0, %v34_v0  ;;  %577 = vset.pattern.permute.xlu1 %v627_v4  ;;  %384 = vmatprep.mubr.bf16.mxu1 %v627_v4  ;;  %v583_v7 = vld [vmem:[%s795_s0 + $0x14] ss:$8 sps:$4 sm:$0xff]   ;;  %v585_v8 = vld [vmem:[%s795_s0 + $0x10] ss:$8 sps:$4 sm:$0xff]   ;;  %v586_v10 = vld [vmem:[%s795_s0 + $0x4] ss:$8 sps:$4 sm:$0xff]  }
   0x3   :  { %v49_v9 = vld [vmem:[%s797_s2 + $0x30] sm:$0xff]  ;;  %v47_v11 = vld [vmem:[%s797_s2 + $0x20] sm:$0xff]  ;;  %v50_v12 = vld [vmem:[%s797_s2 + $0x38] sm:$0xff] }
   0x4   :  { %556 = vmatprep.subr.msk.bf16.mxu0 %vm159_vm0, %v555_v1  ;;  %v161_v5 = vsel %vm159_vm0, %v554_v2, 0  ;;  %83 = vperm.xlu0 %576, %v49_v9   ;;  %v48_v13 = vld [vmem:[%s797_s2 + $0x28] sm:$0xff]  ;;  %v589_v15 = vld [vmem:[%s796_s1] sm:$0xff]   ;;  %v45_v16 = vld [vmem:[%s797_s2 + $0x10] sm:$0xff] }
   0x5   :  { %175 = vmatpush1.bf16.msra.mxu0 %v161_v5  ;;  %73 = vperm.xlu1 %577, %v47_v11   ;;  %v588_v14 = vld [vmem:[%s795_s0] ss:$8 sps:$4 sm:$0xff]   ;;  %v46_v17 = vld [vmem:[%s797_s2 + $0x18] sm:$0xff] }
   0x6   :  { %176 = vmatprep.subr.bf16.mxu0 %v580_v3 }
   0x8   :  { %88 = vperm.xlu0 %576, %v50_v12  }
   0x9   :  { %177 = vmatpush1.bf16.msra.mxu0 %v582_v6  ;;  %78 = vperm.xlu1 %577, %v48_v13  }
   0xa   :  { %178 = vmatprep.subr.bf16.mxu0 %v583_v7 }
   0xd   :  { %179 = vmatpush1.bf16.msra.mxu0 %v585_v8 }
   0xe   :  { %180 = vmatprep.subr.bf16.mxu0 %v586_v10 }
  0x11   :  { %181 = vmatpush1.bf16.msra.mxu0 %v588_v14 }
  0x12   :  { %12 = vsyncpa [#allocation3], 0  ;;  %63 = vperm.xlu0 %576, %v45_v16   ;;  %68 = vperm.xlu1 %577, %v46_v17   ;;  %v43_v18 = vld [vmem:[%s797_s2] sm:$0xff]  ;;  %v44_v19 = vld [vmem:[%s797_s2 + $0x8] sm:$0xff]  ;;  %vm339_vm2 = vcmask 523264  }
  0x13   :  { %v277_v20 = vld [vmem:[%s799_s4 + $0x30] sm:$0xff]  ;;  %v590_v21 = vld [vmem:[%s796_s1 + $0x8] sm:$0xff]   ;;  %v278_v22 = vld [vmem:[%s799_s4 + $0x38] sm:$0xff] }
  0x14   :  { %557 = vmatmul.mubr.msk.bf16.vlgmr.msra.gmra.mxu0 %vm146_vm1, %v589_v15  ;;  %v275_v23 = vld [vmem:[%s799_s4 + $0x20] sm:$0xff]  ;;  %v276_v24 = vld [vmem:[%s799_s4 + $0x28] sm:$0xff]  ;;  %v273_v25 = vld [vmem:[%s799_s4 + $0x10] sm:$0xff] }
  0x15   :  { %208 = vmatprep.mubr.bf16.mxu0 %v627_v4  ;;  %v591_v26 = vld [vmem:[%s796_s1 + $0x10] sm:$0xff]   ;;  %v274_v27 = vld [vmem:[%s799_s4 + $0x18] sm:$0xff]  ;;  %v271_v28 = vld [vmem:[%s799_s4] sm:$0xff] }
  0x16   :  { %53 = vperm.xlu0 %576, %v43_v18   ;;  %58 = vperm.xlu1 %577, %v44_v19   ;;  %v272_v29 = vld [vmem:[%s799_s4 + $0x8] sm:$0xff]  ;;  %v450_v30 = vld [vmem:[%s801_s6] sm:$0x7]  ;;  %v592_v31 = vld [vmem:[%s796_s1 + $0x18] sm:$0xff]  }
  0x1a   :  { %311 = vperm.xlu0 %576, %v277_v20   ;;  %316 = vperm.xlu1 %577, %v278_v22  }
  0x1c   :  { %558 = vmatmul.mubr.msk.bf16.gmra.mxu0 %vm146_vm1, %v590_v21 }
  0x1d   :  { %218 = vmatprep.mubr.bf16.mxu0 %v627_v4 }
  0x1e   :  { %301 = vperm.xlu0 %576, %v275_v23   ;;  %306 = vperm.xlu1 %577, %v276_v24  }
  0x22   :  { %291 = vperm.xlu0 %576, %v273_v25   ;;  %296 = vperm.xlu1 %577, %v274_v27  }
  0x24   :  { %559 = vmatmul.mubr.msk.bf16.gmra.mxu0 %vm146_vm1, %v591_v26 }
  0x25   :  { %228 = vmatprep.mubr.bf16.mxu0 %v627_v4 }
  0x26   :  { %281 = vperm.xlu0 %576, %v271_v28   ;;  %286 = vperm.xlu1 %577, %v272_v29  }
  0x2a   :  { %453 = vperm.xlu0 %576, %v450_v30  }
  0x2c   :  { %560 = vmatmul.mubr.msk.bf16.gmra.mxu0 %vm146_vm1, %v592_v31 }
  0x2d   :  { %491 = vmatprep.mubr.bf16.mxu0 %v627_v4 }
  0x7f   :  { %v84_v43 = vpop.permute.xlu0 %83 }
  0x80   :  { %v74_v41 = vpop.permute.xlu1 %73 }
  0x83   :  { %v89_v48 = vpop.permute.xlu0 %88 }
  0x84   :  { %v79_v46 = vpop.permute.xlu1 %78 }
  0x8d   :  { %v69_v54 = vpop.permute.xlu1 %68  ;;  %v64_v59 = vpop.permute.xlu0 %63 }
  0x91   :  { %v59_v8 = vpop.permute.xlu1 %58  ;;  %v54_v15 = vpop.permute.xlu0 %53 }
  0xd4   :  { %v200_v32 = vpop.f32.mrf.mxu0 }
  0xd5   :  { %v201_v25 = vadd.f32 %v200_v32, %v54_v15  ;;  %v594_v32 = vld [vmem:[%s798_s3 + $0x8] sm:$0xff]  }
  0xd6   :  { %v202_v33 = vpop.f32.mrf.mxu0 }
  0xd7   :  { %v203_v18 = vadd.f32 %v202_v33, %v54_v15  ;;  %v239_v31 = vmax.f32 %v201_v25, 0.0  ;;  %v593_v33 = vld [vmem:[%s798_s3] sm:$0xff]  }
  0xd8   :  { %v204_v34 = vpop.f32.mrf.mxu0 }
  0xd9   :  { %v205_v20 = vadd.f32 %v204_v34, %v59_v8  ;;  %v240_v27 = vmax.f32 %v203_v18, 0.0  ;;  %v595_v34 = vld [vmem:[%s798_s3 + $0x10] sm:$0xff]  }
  0xda   :  { %v206_v35 = vpop.f32.mrf.mxu0 }
  0xdb   :  { %v207_v12 = vadd.f32 %v206_v35, %v59_v8  ;;  %v241_v28 = vmax.f32 %v205_v20, 0.0 }
  0xdc   :  { %v210_v36 = vpop.f32.mrf.mxu0 }
  0xdd   :  { %v211_v16 = vadd.f32 %v210_v36, %v64_v59  ;;  %v242_v23 = vmax.f32 %v207_v12, 0.0  ;;  %v263_v35 = vpack.c.bf16 %v241_v28, %v239_v31  ;;  %v596_v36 = vld [vmem:[%s798_s3 + $0x18] sm:$0xff]  }
  0xde   :  { %v212_v37 = vpop.f32.mrf.mxu0 }
  0xdf   :  { %v213_v5 = vadd.f32 %v212_v37, %v64_v59  ;;  %v243_v26 = vmax.f32 %v211_v16, 0.0  ;;  %v264_v30 = vpack.c.bf16 %v242_v23, %v240_v27 }
  0xe0   :  { %v214_v38 = vpop.f32.mrf.mxu0 }
  0xe1   :  { %v215_v9 = vadd.f32 %v214_v38, %v69_v54  ;;  %v244_v19 = vmax.f32 %v213_v5, 0.0 }
  0xe2   :  { %v216_v39 = vpop.f32.mrf.mxu0 }
  0xe3   :  { %v217_v62 = vadd.f32 %v216_v39, %v69_v54  ;;  %v245_v21 = vmax.f32 %v215_v9, 0.0 }
  0xe4   :  { %v220_v40 = vpop.f32.mrf.mxu0 }
  0xe5   :  { %v221_v2 = vadd.f32 %v220_v40, %v74_v41  ;;  %v246_v13 = vmax.f32 %v217_v62, 0.0  ;;  %v265_v29 = vpack.c.bf16 %v245_v21, %v243_v26 }
  0xe6   :  { %v222_v42 = vpop.f32.mrf.mxu0 }
  0xe7   :  { %v223_v57 = vadd.f32 %v222_v42, %v74_v41  ;;  %v247_v17 = vmax.f32 %v221_v2, 0.0  ;;  %v266_v24 = vpack.c.bf16 %v246_v13, %v244_v19 }
  0xe8   :  { %v224_v44 = vpop.f32.mrf.mxu0 }
  0xe9   :  { %v225_v60 = vadd.f32 %v224_v44, %v79_v46  ;;  %v248_v6 = vmax.f32 %v223_v57, 0.0 }
  0xea   :  { %v226_v45 = vpop.f32.mrf.mxu0 }
  0xeb   :  { %v227_v51 = vadd.f32 %v226_v45, %v79_v46  ;;  %v249_v10 = vmax.f32 %v225_v60, 0.0  ;;  %v317_v46 = vpop.permute.xlu1 %316 }
  0xec   :  { %v230_v47 = vpop.f32.mrf.mxu0 }
  0xed   :  { %v231_v55 = vadd.f32 %v230_v47, %v84_v43  ;;  %v250_v63 = vmax.f32 %v227_v51, 0.0  ;;  %v267_v22 = vpack.c.bf16 %v249_v10, %v247_v17 }
  0xee   :  { %v232_v49 = vpop.f32.mrf.mxu0 }
  0xef   :  { %v233_v52 = vadd.f32 %v232_v49, %v84_v43  ;;  %v251_v3 = vmax.f32 %v231_v55, 0.0  ;;  %v268_v14 = vpack.c.bf16 %v250_v63, %v248_v6 }
  0xf0   :  { %v234_v50 = vpop.f32.mrf.mxu0 }
  0xf1   :  { %v235_v53 = vadd.f32 %v234_v50, %v89_v48  ;;  %v252_v0 = vmax.f32 %v233_v52, 0.0  ;;  %v307_v50 = vpop.permute.xlu1 %306 }
  0xf2   :  { %v236_v56 = vpop.f32.mrf.mxu0 }
  0xf3   :  { %v237_v58 = vadd.f32 %v236_v56, %v89_v48  ;;  %v253_v61 = vmax.f32 %v235_v53, 0.0  ;;  %v312_v48 = vpop.permute.xlu0 %311 }
  0xf5   :  { %v254_v1 = vmax.f32 %v237_v58, 0.0  ;;  %v269_v11 = vpack.c.bf16 %v253_v61, %v251_v3  ;;  %v297_v58 = vpop.permute.xlu1 %296 }
  0xf7   :  { %v270_v7 = vpack.c.bf16 %v254_v1, %v252_v0  ;;  %v302_v52 = vpop.permute.xlu0 %301 }
  0xf9   :  { %360 = vmatprep.subr.bf16.mxu1 %v270_v7  ;;  %v287_v12 = vpop.permute.xlu1 %286 }
  0xfa   :  { %361 = vmatpush1.bf16.msra.mxu1 %v269_v11 }
  0xfb   :  { %362 = vmatprep.subr.bf16.mxu1 %v268_v14  ;;  %v292_v63 = vpop.permute.xlu0 %291 }
  0xfe   :  { %363 = vmatpush1.bf16.msra.mxu1 %v267_v22 }
  0xff   :  { %364 = vmatprep.subr.bf16.mxu1 %v266_v24  ;;  %v282_v19 = vpop.permute.xlu0 %281 }
 0x102   :  { %365 = vmatpush1.bf16.msra.mxu1 %v265_v29 }
 0x103   :  { %366 = vmatprep.subr.bf16.mxu1 %v264_v30 }
 0x106   :  { %367 = vmatpush1.bf16.msra.mxu1 %v263_v35 }
 0x109   :  { %565 = vmatmul.mubr.msk.bf16.vlgmr.msra.gmra.mxu1 %vm339_vm2, %v593_v33 }
 0x10a   :  { %394 = vmatprep.mubr.bf16.mxu1 %v627_v4 }
 0x111   :  { %566 = vmatmul.mubr.msk.bf16.gmra.mxu1 %vm339_vm2, %v594_v32 }
 0x112   :  { %404 = vmatprep.mubr.bf16.mxu1 %v627_v4 }
 0x119   :  { %567 = vmatmul.mubr.msk.bf16.gmra.mxu1 %vm339_vm2, %v595_v34 }
 0x11a   :  { %414 = vmatprep.mubr.bf16.mxu1 %v627_v4 }
 0x121   :  { %568 = vmatmul.mubr.msk.bf16.gmra.mxu1 %vm339_vm2, %v596_v36 }
 0x1c9   :  { %v386_v37 = vpop.f32.mrf.mxu1 }
 0x1ca   :  { %v387_v29 = vadd.f32 %v386_v37, %v282_v19 }
 0x1cb   :  { %v388_v38 = vpop.f32.mrf.mxu1 }
 0x1cc   :  { %v389_v22 = vadd.f32 %v388_v38, %v282_v19  ;;  %v425_v34 = vmax.f32 %v387_v29, 0.0  ;;  %v441_v38 = vld [vmem:[%s800_s5] sm:$0x3]  ;;  %s628_s5 = smov [#allocation2]  }
 0x1cd   :  { %v390_v39 = vpop.f32.mrf.mxu1  ;;  %s536_s14 = sshll.u32 %s628_s5, 4  ;;  %s537_s14 = int_to_ptr.vmem [resolvable:$true] %s536_s14 }
 0x1ce   :  { %v391_v24 = vadd.f32 %v390_v39, %v287_v12  ;;  %v426_v31 = vmax.f32 %v389_v22, 0.0  ;;  %v500_v39 = vlaneseq  ;;  %s605_s15 = scalar_lea.vmem %s537_s14, 128  ;;  %p610_p1 = scmp.lt.s32.totalorder %s537_s14, %s537_s14 }
 0x1cf   :  { %v392_v40 = vpop.f32.mrf.mxu1  ;;  %p606_p0 = scmp.ne.s32.totalorder %s537_s14, %s605_s15  ;;  %p611_p2 = scmp.lt.s32.totalorder %s605_s15, %s605_s15 }
 0x1d0   :  { %v393_v16 = vadd.f32 %v392_v40, %v287_v12  ;;  %v427_v35 = vmax.f32 %v391_v24, 0.0  ;;  %v501_v37 = vshrl.u32 %v500_v39, 7  ;;  %v454_v40 = vpop.permute.xlu0 %453 }
 0x1d1   :  { %v396_v41 = vpop.f32.mrf.mxu1  ;;  %p612_p3 = por %p611_p2, %p610_p1 }
 0x1d2   :  { %v397_v20 = vadd.f32 %v396_v41, %v292_v63  ;;  %v428_v27 = vmax.f32 %v393_v16, 0.0  ;;  %v442_v36 = vpack.c.bf16 %v427_v35, %v425_v34  ;;  %vm502_vm3 = vcmp.eq.s32.totalorder %v501_v37, 0 }
 0x1d3   :  { %v398_v42 = vpop.f32.mrf.mxu1  ;;  %p613_p4 = pnand %p612_p3, %p606_p0 }
 0x1d4   :  { %v399_v9 = vadd.f32 %v398_v42, %v292_v63  ;;  %v429_v30 = vmax.f32 %v397_v20, 0.0  ;;  %v443_v32 = vpack.c.bf16 %v428_v27, %v426_v31 }
 0x1d5   :  { %v400_v43 = vpop.f32.mrf.mxu1 }
 0x1d6   :  { %v401_v13 = vadd.f32 %v400_v43, %v297_v58  ;;  %v430_v23 = vmax.f32 %v399_v9, 0.0 }
 0x1d7   :  { %v402_v44 = vpop.f32.mrf.mxu1 }
 0x1d8   :  { %v403_v2 = vadd.f32 %v402_v44, %v297_v58  ;;  %v431_v25 = vmax.f32 %v401_v13, 0.0 }
 0x1d9   :  { %v406_v45 = vpop.f32.mrf.mxu1 }
 0x1da   :  { %v407_v7 = vadd.f32 %v406_v45, %v302_v52  ;;  %v432_v17 = vmax.f32 %v403_v2, 0.0  ;;  %v444_v33 = vpack.c.bf16 %v431_v25, %v429_v30 }
 0x1db   :  { %v408_v47 = vpop.f32.mrf.mxu1 }
 0x1dc   :  { %v409_v61 = vadd.f32 %v408_v47, %v302_v52  ;;  %v433_v21 = vmax.f32 %v407_v7, 0.0  ;;  %v445_v28 = vpack.c.bf16 %v432_v17, %v430_v23 }
 0x1dd   :  { %v410_v49 = vpop.f32.mrf.mxu1 }
 0x1de   :  { %v411_v0 = vadd.f32 %v410_v49, %v307_v50  ;;  %v434_v10 = vmax.f32 %v409_v61, 0.0 }
 0x1df   :  { %v412_v4 = vpop.f32.mrf.mxu1 }
 0x1e0   :  { %v413_v55 = vadd.f32 %v412_v4, %v307_v50  ;;  %v435_v14 = vmax.f32 %v411_v0, 0.0 }
 0x1e1   :  { %v416_v51 = vpop.f32.mrf.mxu1 }
 0x1e2   :  { %v417_v59 = vadd.f32 %v416_v51, %v312_v48  ;;  %v436_v3 = vmax.f32 %v413_v55, 0.0  ;;  %v446_v26 = vpack.c.bf16 %v435_v14, %v433_v21 }
 0x1e3   :  { %v418_v53 = vpop.f32.mrf.mxu1 }
 0x1e4   :  { %v419_v56 = vadd.f32 %v418_v53, %v312_v48  ;;  %v437_v8 = vmax.f32 %v417_v59, 0.0  ;;  %v447_v18 = vpack.c.bf16 %v436_v3, %v434_v10 }
 0x1e5   :  { %v420_v54 = vpop.f32.mrf.mxu1 }
 0x1e6   :  { %v421_v57 = vadd.f32 %v420_v54, %v317_v46  ;;  %v438_v5 = vmax.f32 %v419_v56, 0.0 }
 0x1e7   :  { %v422_v60 = vpop.f32.mrf.mxu1 }
 0x1e8   :  { %v423_v62 = vadd.f32 %v422_v60, %v317_v46  ;;  %v439_v1 = vmax.f32 %v421_v57, 0.0 }
 0x1ea   :  { %v440_v6 = vmax.f32 %v423_v62, 0.0  ;;  %v448_v15 = vpack.c.bf16 %v439_v1, %v437_v8 }
 0x1ec   :  { %v449_v11 = vpack.c.bf16 %v440_v6, %v438_v5 }
 0x1ee   :  { %467 = vmatprep.subr.bf16.mxu0 %v449_v11 }
 0x1ef   :  { %468 = vmatpush1.bf16.msra.mxu0 %v448_v15 }
 0x1f0   :  { %469 = vmatprep.subr.bf16.mxu0 %v447_v18 }
 0x1f3   :  { %470 = vmatpush1.bf16.msra.mxu0 %v446_v26 }
 0x1f4   :  { %471 = vmatprep.subr.bf16.mxu0 %v445_v28 }
 0x1f7   :  { %472 = vmatpush1.bf16.msra.mxu0 %v444_v33 }
 0x1f8   :  { %473 = vmatprep.subr.bf16.mxu0 %v443_v32 }
 0x1fb   :  { %474 = vmatpush1.bf16.msra.mxu0 %v442_v36 }
 0x1fe   :  { %569 = vmatmul.mubr.msk.bf16.vlgmr.msra.gmra.mxu0 %vm339_vm2, %v441_v38 }
 0x2be   :  { %v493_v41 = vpop.f32.mrf.mxu0 }
 0x2bf   :  { %v494_v42 = vadd.f32 %v493_v41, %v454_v40 }
 0x2c0   :  { %v495_v43 = vpop.f32.mrf.mxu0 }
 0x2c1   :  { %v503_v44 = vmul.f32 2.0, %v494_v42  ;;  %v496_v45 = vadd.f32 %v495_v43, %v454_v40 }
 0x2c2   :  { %v497_v46 = vpop.f32.mrf.mxu0 }
 0x2c3   :  { %v505_v47 = vsel %vm502_vm3, %v503_v44, %v494_v42  ;;  %v504_v48 = vmul.f32 2.0, %v496_v45 }
 0x2c4   :  { %v570_v49 = vmul.f32 -1.442695, %v505_v47  ;;  %v498_v4 = vpop.f32.mrf.mxu0 }
 0x2c5   :  { %v506_v50 = vsel %vm502_vm3, %v504_v48, %v496_v45 }
 0x2c6   :  { %597 = vpow2.f32 %v570_v49  ;;  %v571_v51 = vmul.f32 -1.442695, %v506_v50 }
 0x2c8   :  { %599 = vpow2.f32 %v571_v51 }
 0x2d3   :  { %v598_v52 = vpop.eup %597 }
 0x2d4   :  { %v513_v53 = vadd.f32 1.0, %v598_v52 }
 0x2d5   :  { %v600_v54 = vpop.eup %599 }
 0x2d6   :  { %601 = vrcp.f32 %v513_v53  ;;  %v514_v55 = vadd.f32 1.0, %v600_v54 }
 0x2d8   :  { %603 = vrcp.f32 %v514_v55 }
 0x2e3   :  { %v602_v56 = vpop.eup %601 }
 0x2e4   :  { %v519_v57 = vmul.f32 2.0, %v602_v56 }
 0x2e5   :  { %v604_v58 = vpop.eup %603 }
 0x2e6   :  { %v520_v59 = vmul.f32 2.0, %v604_v58  ;;  %v572_v60 = vadd.f32 -1.0, %v519_v57 }
 0x2e8   :  { %v573_v61 = vadd.f32 -1.0, %v520_v59  ;;  %v523_v62 = vsel %vm502_vm3, %v572_v60, %v602_v56 }
 0x2ea   :  { %v524_v63 = vsel %vm502_vm3, %v573_v61, %v604_v58 }
 0x2eb   :  { %v527_v0 = vcombine.low %v523_v62, %v524_v63 }
 0x2ed   :  { %529 = vst [vmem:[#allocation2] sm:$0x77] %v527_v0 }
 0x2ee   :  { %616 = shalt.err (!%p613_p4)
}
 0x2ef   :  { %539 = dma.vmem_to_hbm [thread:$0]  %s537_s14, 128, %s802_s7, [#allocation3]  }
 0x2f0   :  { %625 = dma.done.wait [#allocation3], 128  }
 0x2f1   :  { %626 = vsyncadd [#allocation3], 4294967168 }
 0x2f2   :  { %543 = vsyncpa [#allocation3], 1 }

</bundles_post_ra>
